<compile_context>
chip_gen: v7x
topology: tpu7x:2x2x1
jax: 0.10.0
libtpu: 0.0.40
codegen_flags: <defaults>
</compile_context>

<pallas_src>
import functools

import numpy as np
import jax
import jax.numpy as jnp
from jax.experimental import pallas as pl
from jax.experimental.pallas import tpu as pltpu


_FUSE_MAX_LANES = 1024     # fuse all d^2 segments into one matmul when K = d^2*d*W <= this
_SEG_LANES_TARGET = 512    # target per-matmul lane width (d*Wt) for the W-tiled path


# ----------------------------------------------------------------------------
# Kernels
# ----------------------------------------------------------------------------
def _upsample_fused_kernel(ct_ref, x_ref, o_ref, *, d2, precision):
    """One permutation matmul + one lane-dense store per grid step.

    ct_ref: (d^2*d*W, d^2*d*W)        0/1 permutation, K order (cc, hh, w),
                                      N order ((hn, hh), wd, wn, ww)
    x_ref : (G_blk, d^2, Hn_blk, d*W) lane axis = (hh, w)
    o_ref : (G_blk, Hn_blk, d^2*d*W)  lane axis = ((hn, hh), wo)
    """
    g_blk, _d2, hn_blk, dW = x_ref.shape
    # LHS lane order (cc, hh, w): concatenate the d^2 channel slabs along lanes,
    # giving one well-shaped MXU matmul instead of d^2 tiny ones.
    lhs = jnp.concatenate([x_ref[:, c, :, :] for c in range(d2)], axis=-1)
    res = jnp.dot(lhs.reshape(g_blk * hn_blk, d2 * dW), ct_ref[...],
                  preferred_element_type=jnp.float32, precision=precision)
    o_ref[...] = res.reshape(g_blk, hn_blk, d2 * dW).astype(o_ref.dtype)


def _upsample_seg_kernel(ct_ref, x_ref, o_ref, *, d, precision):
    """W-tiled segmented path: d^2 matmuls of lane width d*Wt per grid step.

    ct_ref: (d*Wt, d*Wt)                  0/1 permutation, K = (wn, wd, ww) -> N = (wd, wn, ww)
    x_ref : (G_blk, d^2, Hn_blk, d, Wt)   lane axis = Wt (one W tile)
    o_ref : (G_blk, Hn_blk, d^2, d*Wt)    lane axis = output W tile
    """
    g_blk, _d2, hn_blk, _d, Wt = x_ref.shape
    dWt = d * Wt
    ct = ct_ref[...]
    for hn in range(d):
        # the d input channels (wn = 0..d-1) feeding output rows with this hn
        chans = [x_ref[:, hn * d + wn, :, :, :] for wn in range(d)]          # (g, hn_blk, d, Wt)
        for hh in range(d):
            lhs = jnp.concatenate([c[:, :, hh, :] for c in chans], axis=-1)  # (g, hn_blk, d*Wt)
            seg = jnp.dot(lhs.reshape(g_blk * hn_blk, dWt), ct,
                          preferred_element_type=jnp.float32, precision=precision)
            # stream each segment straight to its output row; nothing else stays live
            r = hn * d + hh
            o_ref[:, :, r:r + 1, :] = seg.reshape(g_blk, hn_blk, 1, dWt).astype(o_ref.dtype)


# ----------------------------------------------------------------------------
# Constant 0/1 permutation matrices (exact in bf16 and f32)
# ----------------------------------------------------------------------------
def _fused_perm_matrix(W, d, dtype):
    """(d^2*d*W, d^2*d*W):  (lhs @ P)[n] = lhs[k],
    n = (hn*d + hh)*d*W + wd*d^2 + wn*d + ww,  k = (hn*d + wn)*d*W + hh*W + wd*d + ww."""
    dW = d * W
    L = d * d * dW
    n = np.arange(L)
    hn = n // (d * dW)
    hh = (n // dW) % d
    wo = n % dW
    wd = wo // (d * d)
    wn = (wo % (d * d)) // d
    ww = wo % d
    k = (hn * d + wn) * dW + hh * W + wd * d + ww
    m = np.zeros((L, L), np.float32)
    m[k, n] = 1.0
    return jnp.asarray(m, dtype=dtype)


def _lane_perm_matrix(Wt, d, dtype):
    """(d*Wt, d*Wt):  (lhs @ P)[n] = lhs[k],
    n = wd*d^2 + wn*d + ww (wd local to the W tile),  k = wn*Wt + wd*d + ww."""
    L = d * Wt
    n = np.arange(L)
    wd = n // (d * d)
    wn = (n % (d * d)) // d
    ww = n % d
    k = wn * Wt + wd * d + ww
    m = np.zeros((L, L), np.float32)
    m[k, n] = 1.0
    return jnp.asarray(m, dtype=dtype)


# ----------------------------------------------------------------------------
# Generation-aware sizing
# ----------------------------------------------------------------------------
def _tpu_config():
    """Per-step block budget, scoped-VMEM limit, and TensorCore count."""
    try:
        kind = jax.devices()[0].device_kind.lower()
    except Exception:
        kind = ""
    if any(t in kind for t in ("v5 lite", "v5e", "v6 lite", "v6e")):
        # 128 MiB VMEM, single TensorCore: big blocks, raised scoped-VMEM limit.
        return {"budget": 16 << 20, "vmem_limit": 64 << 20, "cores": 1}
    # v7x (64 MiB / TC, 2 TCs) and unknown chips: conservative blocks, keep the
    # step count divisible by 2 so neither core idles.
    return {"budget": 8 << 20, "vmem_limit": 48 << 20, "cores": 2}


def _choose_blocks(G, Hn, bytes_per_row, budget, num_cores, sublane, extra_steps=1):
    """Largest (g_blk, hn_blk) whose per-step footprint fits `budget`, preferring
    total step counts that split evenly across the chip's TensorCores."""
    hn_cands = sorted({h for h in range(sublane, Hn + 1, sublane) if Hn % h == 0} | {Hn})
    g_cands = [g for g in range(1, G + 1) if G % g == 0]
    best_key, best = None, (1, hn_cands[0])
    for h in hn_cands:
        for g in g_cands:
            blk = bytes_per_row * h * g
            steps = (G // g) * (Hn // h) * extra_steps
            fits = blk <= budget
            balanced = num_cores == 1 or steps % num_cores == 0
            key = (fits, balanced, blk if fits else -blk)
            if best_key is None or key > best_key:
                best_key, best = key, (g, h)
    return best


def _choose_w_tile(W, d):
    """Largest divisor Wt of W (multiple of d) with d*Wt <= 2*_SEG_LANES_TARGET,
    preferring 128-aligned tiles with d*Wt <= _SEG_LANES_TARGET (unmasked stores,
    small constant, HBM-bound matmul).  Falls back to W itself."""
    best_key, best = None, W
    for w in range(d, W + 1, d):
        if W % w:
            continue
        dw = d * w
        if dw > 2 * _SEG_LANES_TARGET:
            continue
        key = (dw <= _SEG_LANES_TARGET and w % 128 == 0,
               w % 128 == 0,
               dw <= _SEG_LANES_TARGET,
               w)
        if best_key is None or key > best_key:
            best_key, best = key, w
    return best


# ----------------------------------------------------------------------------
# Pure-JAX reference (mirrors the three einops rearranges); also the fallback
# for dtypes we do not route through the MXU.
# ----------------------------------------------------------------------------
def upsample_ref(x, d):
    B, C, H, W = x.shape
    c = C // (d * d)
    Hn, Wn = H // d, W // d
    x6 = x.reshape(B, c, d, d, Hn, d, Wn, d)            # b, c, hn, wn, hd, hh, wd, ww
    y = jnp.transpose(x6, (0, 1, 4, 2, 5, 6, 3, 7))     # b, c, hd, hn, hh, wd, wn, ww
    return y.reshape(B, c, H * d, W * d)


# ----------------------------------------------------------------------------
# Wrapper
# ----------------------------------------------------------------------------
def upsample_pallas(x, dilation):
    d = int(dilation)
    B, C, H, W = x.shape
    d2 = d * d
    assert C % d2 == 0 and H % d == 0 and W % d == 0, (x.shape, d)
    if d == 1:
        return x
    if x.dtype not in (jnp.float32, jnp.bfloat16):
        # TODO(synk): non-bf16/f32 dtypes: an MXU permutation is not exact for wide ints
        # (and v7x has no integer MXU); use the plain XLA permutation instead of faking it.
        return upsample_ref(x, d)

    C_out, Hn, Ho, Wo, dW = C // d2, H // d, H * d, W * d, d * W
    G = B * C_out
    itemsize = x.dtype.itemsize
    sublane = 16 if itemsize == 2 else 8          # dtype-aware native sublane packing
    cfg = _tpu_config()
    # 0/1 selection matmul: exact in native bf16; f32 needs HIGHEST so the MXU
    # passes do not truncate mantissas.
    precision = (jax.lax.Precision.HIGHEST if x.dtype == jnp.float32
                 else jax.lax.Precision.DEFAULT)

    if d2 * dW <= _FUSE_MAX_LANES:
        # -------- fused path: one (d^2*d*W)^2 permutation matmul per grid step --------
        L = d2 * dW
        ct = _fused_perm_matrix(W, d, x.dtype)
        x_v = x.reshape(G, d2, Hn, dW)                       # free reshape: lane = (hh, w)
        # VMEM per (g, hd) row: 2x(in+out) double buffers + lhs copy + f32 matmul result
        per_row = 2 * 2 * L * itemsize + L * itemsize + L * 4
        budget = max(cfg["budget"] - 2 * ct.size * itemsize, 1 << 20)  # 2x ct (pipeline copies)
        g_blk, hn_blk = _choose_blocks(G, Hn, per_row, budget, cfg["cores"], sublane)
        out_v = pl.pallas_call(
            functools.partial(_upsample_fused_kernel, d2=d2, precision=precision),
            out_shape=jax.ShapeDtypeStruct((G, Hn, L), x.dtype),
            grid_spec=pltpu.PrefetchScalarGridSpec(
                num_scalar_prefetch=0,
                grid=(G // g_blk, Hn // hn_blk),
                in_specs=[
                    # constant permutation matrix: block index never changes -> DMA'd once
                    pl.BlockSpec((L, L), lambda g, h: (0, 0)),
                    pl.BlockSpec((g_blk, d2, hn_blk, dW), lambda g, h: (g, 0, h, 0)),
                ],
                out_specs=pl.BlockSpec((g_blk, hn_blk, L), lambda g, h: (g, h, 0)),
            ),
            compiler_params=pltpu.CompilerParams(
                dimension_semantics=("parallel", "parallel"),
                vmem_limit_bytes=cfg["vmem_limit"],
            ),
        )(ct, x_v)
        return out_v.reshape(B, C_out, Ho, Wo)              # free reshape back to NCHW

    # -------- W-tiled segmented path: d^2 matmuls of lane width d*Wt per grid step --------
    Wt = _choose_w_tile(W, d)   # TODO(synk): Wt == W (untiled) if W has no suitable divisor
    nwt = W // Wt
    dWt = d * Wt
    ct = _lane_perm_matrix(Wt, d, x.dtype)
    x_v = x.reshape(G, d2, Hn, d, W)                         # free reshape: lane = w
    pad = lambda s: -(-s // 8) * 8                           # sublane padding of inner tiles
    per_row = (2 * (d2 * pad(d) * Wt + pad(d2) * dWt) * itemsize   # in/out double buffers
               + dWt * itemsize + dWt * 4)                          # lhs + f32 segment
    budget = max(cfg["budget"] - 2 * ct.size * itemsize, 1 << 20)
    g_blk, hn_blk = _choose_blocks(G, Hn, per_row, budget, cfg["cores"], sublane,
                                   extra_steps=nwt)
    out_v = pl.pallas_call(
        functools.partial(_upsample_seg_kernel, d=d, precision=precision),
        out_shape=jax.ShapeDtypeStruct((G, Hn, d2, Wo), x.dtype),
        grid_spec=pltpu.PrefetchScalarGridSpec(
            num_scalar_prefetch=0,
            grid=(G // g_blk, Hn // hn_blk, nwt),
            in_specs=[
                pl.BlockSpec((dWt, dWt), lambda g, h, w: (0, 0)),
                pl.BlockSpec((g_blk, d2, hn_blk, d, Wt), lambda g, h, w: (g, 0, h, 0, w)),
            ],
            out_specs=pl.BlockSpec((g_blk, hn_blk, d2, dWt), lambda g, h, w: (g, h, 0, w)),
        ),
        compiler_params=pltpu.CompilerParams(
            dimension_semantics=("parallel", "parallel", "parallel"),
            vmem_limit_bytes=cfg["vmem_limit"],
        ),
    )(ct, x_v)
    return out_v.reshape(B, C_out, Ho, Wo)                   # free reshape back to NCHW


if __name__ == "__main__":
    root = jax.random.PRNGKey(0)
    k1, k2 = jax.random.split(root)
    dilation = 2

    # primary: small NCHW f32 -> fused single-matmul path
    x = jax.random.normal(k1, (2, 8, 16, 16), dtype=jnp.float32)
    out = jax.block_until_ready(upsample_pallas(x, dilation))
    ref = upsample_ref(x, dilation)
    assert out.shape == ref.shape == (2, 2, 32, 32), (out.shape, ref.shape)
    assert bool(jnp.all(out == ref)), "fused f32 path mismatch"

    # native-dtype (bf16) fused path: must stay bit-exact with no f32 upcast of the inputs
    xb = x.astype(jnp.bfloat16)
    outb = jax.block_until_ready(upsample_pallas(xb, dilation))
    assert bool(jnp.all(outb == upsample_ref(xb, dilation))), "fused bf16 path mismatch"

    # wide-W input -> W-tiled segmented path (Wt = 256, two W tiles per row)
    xw = jax.random.normal(k2, (1, 4, 8, 512), dtype=jnp.float32)
    outw = jax.block_until_ready(upsample_pallas(xw, dilation))
    assert outw.shape == (1, 1, 16, 1024), outw.shape
    assert bool(jnp.all(outw == upsample_ref(xw, dilation))), "W-tiled segmented path mismatch"

    print("KERNEL_OK")
</pallas_src>

<mosaic_0001>
module attributes {stable_mosaic.version = 11 : i64} {
  func.func @_upsample_fused_kernel(%arg0: i32, %arg1: i32, %arg2: memref<128x128xf32, #tpu.memory_space<vmem>>, %arg3: memref<2x4x8x32xf32, #tpu.memory_space<vmem>>, %arg4: memref<2x8x128xf32, #tpu.memory_space<vmem>>) attributes {dimension_semantics = [#tpu.dimension_semantics<parallel>, #tpu.dimension_semantics<parallel>], iteration_bounds = array<i64: 2, 1>, scalar_prefetch = 0 : i64, scratch_operands = 0 : i64, tpu.core_type = #tpu.core_type<tc>, window_params = [{pipeline_mode = #tpu.pipeline_mode<synchronous>, transform_indices = @transform_0, window_bounds = array<i64: 128, 128>}, {transform_indices = @transform_1, window_bounds = array<i64: 2, 4, 8, 32>}, {transform_indices = @transform_2, window_bounds = array<i64: 2, 8, 128>}]} {
    %c0 = arith.constant 0 : index
    %c0_0 = arith.constant 0 : index
    %c0_1 = arith.constant 0 : index
    %c0_2 = arith.constant 0 : index
    %0 = vector.load %arg3[%c0, %c0_0, %c0_1, %c0_2] : memref<2x4x8x32xf32, #tpu.memory_space<vmem>>, vector<2x1x8x32xf32>
    %1 = vector.shape_cast %0 : vector<2x1x8x32xf32> to vector<2x8x32xf32>
    %c0_3 = arith.constant 0 : index
    %c1 = arith.constant 1 : index
    %c0_4 = arith.constant 0 : index
    %c0_5 = arith.constant 0 : index
    %2 = vector.load %arg3[%c0_3, %c1, %c0_4, %c0_5] : memref<2x4x8x32xf32, #tpu.memory_space<vmem>>, vector<2x1x8x32xf32>
    %3 = vector.shape_cast %2 : vector<2x1x8x32xf32> to vector<2x8x32xf32>
    %c0_6 = arith.constant 0 : index
    %c2 = arith.constant 2 : index
    %c0_7 = arith.constant 0 : index
    %c0_8 = arith.constant 0 : index
    %4 = vector.load %arg3[%c0_6, %c2, %c0_7, %c0_8] : memref<2x4x8x32xf32, #tpu.memory_space<vmem>>, vector<2x1x8x32xf32>
    %5 = vector.shape_cast %4 : vector<2x1x8x32xf32> to vector<2x8x32xf32>
    %c0_9 = arith.constant 0 : index
    %c3 = arith.constant 3 : index
    %c0_10 = arith.constant 0 : index
    %c0_11 = arith.constant 0 : index
    %6 = vector.load %arg3[%c0_9, %c3, %c0_10, %c0_11] : memref<2x4x8x32xf32, #tpu.memory_space<vmem>>, vector<2x1x8x32xf32>
    %7 = vector.shape_cast %6 : vector<2x1x8x32xf32> to vector<2x8x32xf32>
    %8 = tpu.concatenate %1, %3, %5, %7 in 2 : vector<2x8x32xf32>, vector<2x8x32xf32>, vector<2x8x32xf32>, vector<2x8x32xf32> -> vector<2x8x128xf32>
    %9 = vector.shape_cast %8 : vector<2x8x128xf32> to vector<16x128xf32>
    %c0_12 = arith.constant 0 : index
    %c0_13 = arith.constant 0 : index
    %10 = vector.load %arg2[%c0_12, %c0_13] : memref<128x128xf32, #tpu.memory_space<vmem>>, vector<128x128xf32>
    %cst = arith.constant dense<0.000000e+00> : vector<16x128xf32>
    %11 = tpu.matmul %9, %10, %cst {dimension_numbers = #tpu.dot_dimension_numbers<[1], [0], [0], [1], [0, 0, 1, 1], [], []>, precision = #tpu.contract_precision<fp32>} : vector<16x128xf32>, vector<128x128xf32>, vector<16x128xf32> -> vector<16x128xf32>
    %12 = vector.shape_cast %11 : vector<16x128xf32> to vector<2x8x128xf32>
    %c0_14 = arith.constant 0 : index
    %c0_15 = arith.constant 0 : index
    %c0_16 = arith.constant 0 : index
    %13 = vector.load %arg4[%c0_14, %c0_15, %c0_16] : memref<2x8x128xf32, #tpu.memory_space<vmem>>, vector<2x8x128xf32>
    tpu.vector_store %arg4[%c0_14, %c0_15, %c0_16], %12 {strides = array<i32>} : memref<2x8x128xf32, #tpu.memory_space<vmem>>, vector<2x8x128xf32>,
    return
  }
  func.func @transform_0(%arg0: i32, %arg1: i32) -> (i32, i32) {
    %c0_i32 = arith.constant 0 : i32
    %c0_i32_0 = arith.constant 0 : i32
    %c0_i32_1 = arith.constant 0 : i32
    return %c0_i32, %c0_i32_0 : i32, i32
  }
  func.func @transform_1(%arg0: i32, %arg1: i32) -> (i32, i32, i32, i32) {
    %c0_i32 = arith.constant 0 : i32
    %c0_i32_0 = arith.constant 0 : i32
    %c0_i32_1 = arith.constant 0 : i32
    return %arg0, %c0_i32, %arg1, %c0_i32_0 : i32, i32, i32, i32
  }
  func.func @transform_2(%arg0: i32, %arg1: i32) -> (i32, i32, i32) {
    %c0_i32 = arith.constant 0 : i32
    %c0_i32_0 = arith.constant 0 : i32
    return %arg0, %arg1, %c0_i32 : i32, i32, i32
  }
}

</mosaic_0001>

<bundles_post_ra>
// kernel: tpu_custom_call.1
= control target key start
LH: loop header
LB: loop body
LE: loop exit
PB: predicated region body
PF: predicated region fallthrough
CT: control target
= control target key end

     0   :  { %7 = vsyncpa [#allocation3], 0  ;;  %s2368_s0 = inlined_call_operand.hbm [shape: f32[128,128], index: 0, kind: input, shape index: {}]   ;;  %s2369_s1 = inlined_call_operand.hbm [shape: f32[4,4,8,32], index: 1, kind: input, shape index: {}]   ;;  %s2370_s2 = inlined_call_operand.hbm [shape: f32[4,8,128], index: 2, kind: output, shape index: {}]  }
   0x1   :  { %8 = vsyncpa [#allocation6], 0 }
   0x2   :  { %10 = vsyncpa [#allocation6 + $0x1], 0 }
   0x3   :  { %11 = vsyncpa [#allocation4], 0 }
   0x4   :  { %13 = vsyncpa [#allocation4 + $0x1], 0  ;;  %s1853_s9 = smov 0   ;;  %s1855_s10 = smov 0  }
   0x5   :  { %s1857_s11 = smov 0   ;;  %s1859_s12 = smov 0  }
   0x6   :  { %s1861_s13 = smov 0   ;;  %s1863_s14 = smov 0  }
   0x7 LB: > { %s1055_s15 = sadd.s32 4294967295, %s1826_s14   ;;  %s1056_s16 = sadd.s32 4294967294, %s1826_s14   ;;  %s1826_s14 = sphi %s1863_s14, %s19_s14   ;;  %s1822_s13 = sphi %s1861_s13, %s2394_s13   ;;  %s1818_s12 = sphi %s1859_s12, %s2393_s12   ;;  %s1814_s11 = sphi %s1857_s11, %s2392_s11   ;;  %s1810_s10 = sphi %s1855_s10, %s2391_s10   ;;  %s1806_s9 = sphi %s1853_s9, %s2390_s9  }
   0x8   : > { %p74_p0 = scmp.ne.s32.totalorder %s1810_s10, %s1806_s9  ;;  %p1887_p1 = scmp.eq.s32.totalorder %s1055_s15, 0 }
   0x9   : > { %p1891_p2 = scmp.eq.s32.totalorder %s1055_s15, 1  ;;  %p106_p3 = scmp.eq.s32.totalorder %s1056_s16, 1 }
   0xa   : > { %s2375_s17 = scalar_select %p1887_p1, 1, 0 }
   0xb   : > { %s2376_s18 = scalar_select %p1891_p2, 1, 0 }
   0xc   : > { %p1897_p4 = por %p1887_p1, %p74_p0  ;;  %p1057_p5 = scmp.ge.s32.totalorder %s1826_s14, 1 }
   0xd   : > { %p1902_p6 = por %p106_p3, %p74_p0  ;;  %p113_p7 = scmp.lt.s32.totalorder %s1826_s14, 3 }
   0xe   : > { %s2377_s19 = scalar_select %p1897_p4, 1, 0 }
   0xf   : > { %s2378_s20 = scalar_select %p1902_p6, 1, 0 }
  0x10   : > { %p1907_p8 = pnand %p1057_p5, %p113_p7  ;;  %s1828_s22 = smov [#allocation2]  }
  0x11   : > { %s125_s23 = sshll.u32 %s1828_s22, 4  ;;  %s31_s25 = sadd.s32 1, %s1822_s13  ;;  %s126_s23 = int_to_ptr.vmem [resolvable:$true] %s125_s23 }
  0x12   : > { %s2379_s21 = scalar_select %p1907_p8, 1, 0 }
  0x13   : > { %p1610_p9 = pneg %p1907_p8  ;;  %s1682_s28 = scalar_lea.hbm %s2368_s0, 2048 }
  0x14   : > { %p1683_p12 = scmp.ne.s32.totalorder %s2368_s0, %s1682_s28  ;;  %p1689_p5 = scmp.lt.u32.totalorder %s1682_s28, %s2368_s0 }
  0x15   : > { %p1916_p11 = pnand %p1610_p9, %p1887_p1 }
  0x17   : > { %p1684_p13 = pneg %p1916_p11 }
  0x19   : > { %p1685_p0 = pnand %p1684_p13, %p1683_p12 }
  0x1b   : > { %p1686_p3 = pneg %p1685_p0 }
  0x1d   : > { %p1691_p7 = pnand %p1689_p5, %p1686_p3 }
  0x1f   : > { %1694 = shalt.err (!%p1691_p7)
}
  0x20   : > { %s1695_s5 = scalar_lea.vmem %s126_s23, 2048  ;;  %p1703_p4 = scmp.lt.s32.totalorder %s126_s23, %s126_s23 }
  0x21   : > { %p1696_p9 = scmp.ne.s32.totalorder %s126_s23, %s1695_s5  ;;  %p1704_p1 = scmp.lt.s32.totalorder %s1695_s5, %s1695_s5 }
  0x23   : > { %p1698_p10 = pnand %p1696_p9, %p1684_p13  ;;  %p1705_p8 = por %p1704_p1, %p1703_p4 }
  0x25   : > { %p1699_p6 = pneg %p1698_p10 }
  0x27   : > { %p1706_p2 = pnand %p1705_p8, %p1699_p6 }
  0x29   : > { %1709 = shalt.err (!%p1706_p2)
}
  0x2a   : > { %s1829_s6 = smov 128   ;;  %s1830_s7 = smov 8  }
  0x2b   : > { %1613 = dma.hbm_to_vmem [thread:$0]  (!%p1916_p11), %s2368_s0, 2048, %s126_s23, [#allocation3], %s1829_s6, %s1829_s6, %s1830_s7  }
  0x2c   : > { %p33_p1 = scmp.ge.s32.totalorder %s31_s25, 2  ;;  %s61_s16 = sadd.s32 1, %s1814_s11 }
  0x2d   : > { %p68_p2 = scmp.ne.s32.totalorder %s1814_s11, %s1810_s10  ;;  %p69_p4 = scmp.eq.s32.totalorder %s1826_s14, 0 }
  0x2e   : > { %s2396_s25 = smov (%p33_p1, %s31_s25), 0  ;;  %p2382_p8 = scmp.ne.s32.totalorder %s2376_s18, 0 }
  0x2f   : > { %p1946_p6 = por %p69_p4, %p68_p2  ;;  %s56_s26 = ssub.s32 %s1822_s13, %s2396_s25 }
  0x30   : > { %p1952_p10 = por %p2382_p8, %p68_p2  ;;  %p1623_p12 = scmp.lt.s32.totalorder %s1826_s14, 2 }
  0x31   : > { %p59_p11 = scmp.eq.s32.totalorder %s56_s26, 0  ;;  %s139_s23 = sand.u32 1, %s1814_s11  }
  0x32   : > { %s1060_s27 = sshll.u32 %s139_s23, 6  ;;  %s1080_s29 = sshll.u32 %s1822_s13, 10 }
  0x33   : > { %s1961_s28 = scalar_select %p59_p11, %s1814_s11, %s61_s16  }
  0x34   : > { %s1967_s4 = scalar_lea.hbm %s2369_s1, %s1080_s29  ;;  %s143_s18 = scalar_lea.vmem [#allocation5], %s1060_s27 }
  0x35   : > { %s152_s5 = sshll.u32 %s143_s18, 4  ;;  %p1973_p13 = pnand %p1623_p12, %p1946_p6  ;;  %s1969_s5 = int_to_ptr.vmem [resolvable:$true] %s152_s5 }
  0x36   : > { %s1977_s15 = scalar_lea.sflag [#allocation6], %s139_s23  ;;  %s1710_s16 = scalar_lea.hbm %s1967_s4, 1024 }
  0x37   : > { %p1711_p0 = scmp.ne.s32.totalorder %s1967_s4, %s1710_s16  ;;  %p1712_p3 = pneg %p1973_p13 }
  0x38   : > { %s1715_s22 = scalar_lea.hbm %s2369_s1, 2048  ;;  %p1716_p9 = scmp.lt.u32.totalorder %s1967_s4, %s2369_s1 }
  0x39   : > { %p1713_p5 = pnand %p1712_p3, %p1711_p0  ;;  %p1717_p1 = scmp.lt.u32.totalorder %s1715_s22, %s1710_s16 }
  0x3a   : > { %p1719_p4 = scmp.lt.u32.totalorder %s1710_s16, %s1967_s4 }
  0x3b   : > { %p1714_p7 = pneg %p1713_p5  ;;  %p1718_p2 = por %p1717_p1, %p1716_p9 }
  0x3d   : > { %p1720_p6 = por %p1719_p4, %p1718_p2 }
  0x3f   : > { %p1721_p8 = pnand %p1720_p6, %p1714_p7 }
  0x41   : > { %1724 = shalt.err (!%p1721_p8)
}
  0x42   : > { %s1725_s23 = scalar_lea.vmem %s1969_s5, 1024  ;;  %s1831_s3 = smov [#allocation5]  }
  0x43   : > { %p1726_p12 = scmp.ne.s32.totalorder %s1969_s5, %s1725_s23  ;;  %s1730_s18 = sshll.u32 %s1831_s3, 4  ;;  %s1731_s18 = int_to_ptr.vmem [resolvable:$false] %s1730_s18 }
  0x44   : > { %s1732_s26 = scalar_lea.vmem %s1731_s18, 2048  ;;  %p1733_p5 = scmp.lt.s32.totalorder %s1969_s5, %s1731_s18 }
  0x45   : > { %p1728_p11 = pnand %p1726_p12, %p1712_p3  ;;  %p1734_p9 = scmp.lt.s32.totalorder %s1732_s26, %s1725_s23 }
  0x47   : > { %p1729_p0 = pneg %p1728_p11  ;;  %p1735_p1 = por %p1734_p9, %p1733_p5 }
  0x49   : > { %p1736_p2 = pnand %p1735_p1, %p1729_p0 }
  0x4b   : > { %1739 = shalt.err (!%p1736_p2)
}
  0x4c   : > { %1617 = dma.hbm_to_vmem [thread:$0]  (!%p1973_p13), %s1967_s4, 1024, %s1969_s5, %s1977_s15, %s1829_s6, %s1829_s6, %s1830_s7  }
  0x4d   : > { %p2385_p3 = scmp.ne.s32.totalorder %s2379_s21, 0 }
  0x4e   : > { %p2386_p7 = scmp.ne.s32.totalorder (!%p2385_p3), %s2375_s17, 0 }
  0x4f   : > { %164 = sbr.rel (%p2385_p3) target bundleno = 521 (0x209), region = 28 }
  0x56   : > { %1793 = dma.done.wait (%p2386_p7), [#allocation3], 2048  }
  0x57   : > { %1795 = vsyncadd (%p2386_p7), [#allocation3], 4294965248  ;;  %s2015_s16 = sand.u32 1, %s1810_s10   ;;  %p2387_p13 = scmp.ne.s32.totalorder %s2377_s19, 0 }
  0x58   : > { %s1066_s8 = sshll.u32 %s2015_s16, 6  ;;  %s171_s27 = scalar_lea.sflag [#allocation6], %s2015_s16 }
  0x59   : > { %s2019_s22 = scalar_lea.vmem [#allocation5], %s1066_s8 }
  0x5a   : > { %1797 = dma.done.wait (%p2387_p13), %s171_s27, 1024  }
  0x5b   : > { %1799 = vsyncadd (%p2387_p13), %s171_s27, 4294966272  ;;  %v1070_v0 = vld [vmem:[%s2019_s22 + $0x10] sm:$0xff]  ;;  %v1068_v1 = vld [vmem:[%s2019_s22 + $0x8] sm:$0xff]  ;;  %s1832_s17 = smov 64   ;;  %s1833_s21 = smov 32   ;;  %vm232_vm0 = vcmask 261120  }
  0x5c   : > { %218 = vrot.lane.b32.xlu1 %v1070_v0, %s1832_s17  ;;  %210 = vrot.lane.b32.xlu0 %v1068_v1, %s1833_s21  ;;  %v1071_v2 = vld [vmem:[%s2019_s22 + $0x30] sm:$0xff]  ;;  %v241_v3 = vld [vmem:[#allocation2] sm:$0xff]  ;;  %v1069_v4 = vld [vmem:[%s2019_s22 + $0x28] sm:$0xff]  ;;  %s1834_s19 = smov 96   ;;  %vm235_vm1 = vcmask 523264   ;;  %vm238_vm2 = vcmask 785408  }
  0x5d   : > { %v2029_v5 = vld [vmem:[#allocation2 + $0x8] sm:$0xff]  ;;  %v258_v6 = vand.u32 4294901760, %v241_v3  ;;  %v243_v7 = vld [vmem:[#allocation2 + $0x10] sm:$0xff]  ;;  %v244_v9 = vld [vmem:[#allocation2 + $0x18] sm:$0xff]  ;;  %s1067_s6 = sshll.u32 %s2015_s16, 4  ;;  %s1081_s5 = sshll.u32 %s1818_s12, 8 }
  0x5e   : > { %v261_v8 = vand.u32 4294901760, %v2029_v5  ;;  %v264_v10 = vand.u32 4294901760, %v243_v7  ;;  %v245_v11 = vld [vmem:[#allocation2 + $0x20] sm:$0xff]  ;;  %v246_v12 = vld [vmem:[#allocation2 + $0x28] sm:$0xff]  ;;  %v267_v13 = vand.u32 4294901760, %v244_v9  ;;  %v247_v15 = vld [vmem:[#allocation2 + $0x30] sm:$0xff]  ;;  %s2319_s30 = scalar_lea.hbm %s2370_s2, %s1081_s5 }
  0x5f   : > { %v270_v14 = vand.u32 4294901760, %v245_v11  ;;  %v248_v16 = vld [vmem:[#allocation2 + $0x38] sm:$0xff]  ;;  %v2032_v17 = vld [vmem:[#allocation2 + $0x40] sm:$0xff]  ;;  %v273_v19 = vand.u32 4294901760, %v246_v12  ;;  %v276_v20 = vand.u32 4294901760, %v247_v15  ;;  %v2038_v22 = vld [vmem:[#allocation2 + $0x48] sm:$0xff]  ;;  %v2046_v27 = vsub.f32 %v241_v3, %v258_v6 }
  0x60   : > { %220 = vrot.lane.b32.xlu1 %v1071_v2, %s1832_s17  ;;  %212 = vrot.lane.b32.xlu0 %v1069_v4, %s1833_s21  ;;  %v2036_v18 = vpack.c.bf16 %v261_v8, %v258_v6  ;;  %v279_v21 = vand.u32 4294901760, %v248_v16  ;;  %v1073_v23 = vld [vmem:[%s2019_s22 + $0x38] sm:$0xff]  ;;  %v2042_v25 = vpack.c.bf16 %v267_v13, %v264_v10  ;;  %v2044_v26 = vld [vmem:[#allocation2 + $0x50] sm:$0xff]  ;;  %v282_v28 = vand.u32 4294901760, %v2032_v17  ;;  %v2052_v31 = vld [vmem:[#allocation2 + $0x60] sm:$0xff]  ;;  %s194_s7 = scalar_lea.vmem [#allocation7], %s1067_s6 }
  0x61   : > { %v1072_v24 = vld [vmem:[%s2019_s22 + $0x18] sm:$0xff]  ;;  %v285_v29 = vand.u32 4294901760, %v2038_v22  ;;  %v2056_v32 = vld [vmem:[#allocation2 + $0x68] sm:$0xff]  ;;  %v2058_v33 = vpack.c.bf16 %v273_v19, %v270_v14  ;;  %v288_v35 = vand.u32 4294901760, %v2044_v26  ;;  %v294_v37 = vand.u32 4294901760, %v2052_v31  ;;  %v2066_v38 = vld [vmem:[#allocation2 + $0x70] sm:$0xff] }
  0x62   : > { %1497 = vmatprep.subr.bf16.mxu0 %v2036_v18  ;;  %1401 = vmatprep.subr.bf16.mxu1 %v2036_v18  ;;  %v252_v30 = vld [vmem:[#allocation2 + $0x58] sm:$0xff]  ;;  %v2060_v34 = vpack.c.bf16 %v279_v21, %v276_v20  ;;  %v361_v40 = vand.u32 4294901760, %v2046_v27  ;;  %v2071_v41 = vsub.f32 %v243_v7, %v264_v10  ;;  %v297_v43 = vand.u32 4294901760, %v2056_v32  ;;  %s958_s4 = sshll.u32 %s194_s7, 4  ;;  %s944_s23 = scalar_lea.sflag [#allocation4], %s2015_s16  ;;  %s2314_s4 = int_to_ptr.vmem [resolvable:$true] %s958_s4 }
  0x63   : > { %1499 = vmatpush3.bf16.msra.mxu0 %v2036_v18  ;;  %1403 = vmatpush3.bf16.msra.mxu1 %v2036_v18  ;;  %v291_v36 = vand.u32 4294901760, %v252_v30  ;;  %v2068_v39 = vld [vmem:[#allocation2 + $0x78] sm:$0xff]  ;;  %v2073_v42 = vpack.c.bf16 %v285_v29, %v282_v28  ;;  %v2076_v44 = vsub.f32 %v244_v9, %v267_v13  ;;  %v2078_v45 = vsub.f32 %v245_v11, %v270_v14  ;;  %s1740_s3 = scalar_lea.vmem %s2314_s4, 256  ;;  %s1835_s12 = smov [#allocation7]  }
  0x64   : > { %228 = vrot.lane.b32.xlu1 %v1073_v23, %s1834_s19  ;;  %226 = vrot.lane.b32.xlu0 %v1072_v24, %s1834_s19  ;;  %v375_v46 = vand.u32 4294901760, %v2071_v41  ;;  %v2083_v47 = vsub.f32 %v246_v12, %v273_v19  ;;  %v2085_v48 = vsub.f32 %v247_v15, %v276_v20  ;;  %v2087_v49 = vsub.f32 %v248_v16, %v279_v21  ;;  %p1741_p4 = scmp.ne.s32.totalorder %s2314_s4, %s1740_s3  ;;  %s1744_s18 = sshll.u32 %s1835_s12, 4  ;;  %s1745_s18 = int_to_ptr.vmem [resolvable:$false] %s1744_s18 }
  0x65   : > { %1501 = vmatprep.subr.bf16.mxu0 %v2042_v25  ;;  %1405 = vmatprep.subr.bf16.mxu1 %v2042_v25  ;;  %v300_v50 = vand.u32 4294901760, %v2066_v38  ;;  %v303_v51 = vand.u32 4294901760, %v2068_v39  ;;  %v382_v52 = vand.u32 4294901760, %v2076_v44  ;;  %v389_v53 = vand.u32 4294901760, %v2078_v45  ;;  %s1746_s26 = scalar_lea.vmem %s1745_s18, 512  ;;  %p1747_p12 = scmp.lt.s32.totalorder %s2314_s4, %s1745_s18 }
  0x66   : > { %v376_v54 = vsub.f32 %v2071_v41, %v375_v46  ;;  %v396_v55 = vand.u32 4294901760, %v2083_v47  ;;  %v403_v56 = vand.u32 4294901760, %v2085_v48  ;;  %v410_v57 = vand.u32 4294901760, %v2087_v49  ;;  %p1742_p6 = pnand %p1741_p4, %p1952_p10  ;;  %p1748_p11 = scmp.lt.s32.totalorder %s1746_s26, %s1740_s3 }
  0x67   : > { %1503 = vmatpush3.bf16.msra.mxu0 %v2042_v25  ;;  %1407 = vmatpush3.bf16.msra.mxu1 %v2042_v25  ;;  %v2099_v58 = vpack.c.bf16 %v291_v36, %v288_v35  ;;  %v2101_v59 = vpack.c.bf16 %v382_v52, %v375_v46  ;;  %v383_v60 = vsub.f32 %v2076_v44, %v382_v52 }
  0x68   : > { %1505 = vmatprep.subr.bf16.mxu0 %v2058_v33  ;;  %1409 = vmatprep.subr.bf16.mxu1 %v2058_v33  ;;  %v390_v61 = vsub.f32 %v2078_v45, %v389_v53  ;;  %v377_v62 = vand.u32 4294901760, %v376_v54  ;;  %v2107_v63 = vpack.c.bf16 %v396_v55, %v389_v53  ;;  %v397_v0 = vsub.f32 %v2083_v47, %v396_v55  ;;  %p1743_p8 = pneg %p1742_p6  ;;  %p1749_p0 = por %p1748_p11, %p1747_p12 }
  0x69   : > { %v2110_v1 = vpack.c.bf16 %v410_v57, %v403_v56  ;;  %v2117_v2 = vsub.f32 %v2029_v5, %v261_v8  ;;  %v384_v3 = vand.u32 4294901760, %v383_v60  ;;  %v404_v6 = vsub.f32 %v2085_v48, %v403_v56 }
  0x6a   : > { %v391_v4 = vand.u32 4294901760, %v390_v61  ;;  %v398_v7 = vand.u32 4294901760, %v397_v0  ;;  %v411_v9 = vsub.f32 %v2087_v49, %v410_v57  ;;  %v2122_v10 = vsub.f32 %v2032_v17, %v282_v28  ;;  %p1750_p5 = pnand %p1749_p0, %p1743_p8 }
  0x6b   : > { %1507 = vmatpush3.bf16.msra.mxu0 %v2058_v33  ;;  %1411 = vmatpush3.bf16.msra.mxu1 %v2058_v33  ;;  %v2125_v11 = vsub.f32 %v2038_v22, %v285_v29  ;;  %v2127_v12 = vpack.c.bf16 %v384_v3, %v377_v62  ;;  %v405_v13 = vand.u32 4294901760, %v404_v6  ;;  %v2130_v14 = vsub.f32 %v2044_v26, %v288_v35 }
  0x6c   : > { %1509 = vmatprep.subr.bf16.mxu0 %v2060_v34  ;;  %1413 = vmatprep.subr.bf16.mxu1 %v2060_v34  ;;  %v2132_v5 = vsub.f32 %v252_v30, %v291_v36  ;;  %v2136_v8 = vpack.c.bf16 %v398_v7, %v391_v4  ;;  %v412_v15 = vand.u32 4294901760, %v411_v9  ;;  %v417_v16 = vand.u32 4294901760, %v2122_v10 }
  0x6d   : > { %v424_v17 = vand.u32 4294901760, %v2125_v11  ;;  %v368_v19 = vand.u32 4294901760, %v2117_v2  ;;  %v362_v20 = vsub.f32 %v2046_v27, %v361_v40  ;;  %v431_v21 = vand.u32 4294901760, %v2130_v14 }
  0x6e   : > { %v438_v22 = vand.u32 4294901760, %v2132_v5  ;;  %v2148_v23 = vpack.c.bf16 %v412_v15, %v405_v13  ;;  %v418_v26 = vsub.f32 %v2122_v10, %v417_v16  ;;  %v444_v36 = vsub.f32 %v2052_v31, %v294_v37 }
  0x6f   : > { %1511 = vmatpush3.bf16.msra.mxu0 %v2060_v34  ;;  %1415 = vmatpush3.bf16.msra.mxu1 %v2060_v34  ;;  %v2150_v24 = vpack.c.bf16 %v424_v17, %v417_v16  ;;  %v425_v28 = vsub.f32 %v2125_v11, %v424_v17  ;;  %v432_v30 = vsub.f32 %v2130_v14, %v431_v21  ;;  %v363_v9 = vand.u32 4294901760, %v362_v20 }
  0x70   : > { %1513 = vmatprep.subr.bf16.mxu0 %v2073_v42  ;;  %1417 = vmatprep.subr.bf16.mxu1 %v2073_v42  ;;  %v2154_v29 = vpack.c.bf16 %v438_v22, %v431_v21  ;;  %v439_v35 = vsub.f32 %v2132_v5, %v438_v22  ;;  %v2167_v46 = vpack.c.bf16 %v297_v43, %v294_v37  ;;  %v419_v52 = vand.u32 4294901760, %v418_v26 }
  0x71   : > { %v426_v53 = vand.u32 4294901760, %v425_v28  ;;  %v451_v54 = vsub.f32 %v2056_v32, %v297_v43  ;;  %v369_v55 = vsub.f32 %v2117_v2, %v368_v19  ;;  %v433_v56 = vand.u32 4294901760, %v432_v30 }
  0x72   : > { %v440_v57 = vand.u32 4294901760, %v439_v35  ;;  %v445_v60 = vand.u32 4294901760, %v444_v36  ;;  %v458_v37 = vsub.f32 %v2066_v38, %v300_v50  ;;  %v465_v32 = vsub.f32 %v2068_v39, %v303_v51 }
  0x73   : > { %1515 = vmatpush3.bf16.msra.mxu0 %v2073_v42  ;;  %1419 = vmatpush3.bf16.msra.mxu1 %v2073_v42  ;;  %v2175_v31 = vpack.c.bf16 %v426_v53, %v419_v52  ;;  %v452_v61 = vand.u32 4294901760, %v451_v54  ;;  %v2195_v7 = vpack.c.bf16 %v303_v51, %v300_v50  ;;  %v370_v13 = vand.u32 4294901760, %v369_v55 }
  0x74   : > { %1517 = vmatprep.subr.bf16.mxu0 %v2099_v58  ;;  %1421 = vmatprep.subr.bf16.mxu1 %v2099_v58  ;;  %v2183_v43 = vpack.c.bf16 %v440_v57, %v433_v56  ;;  %v446_v62 = vsub.f32 %v444_v36, %v445_v60  ;;  %v459_v4 = vand.u32 4294901760, %v458_v37  ;;  %v466_v6 = vand.u32 4294901760, %v465_v32 }
  0x75   : > { %v2187_v0 = vpack.c.bf16 %v452_v61, %v445_v60  ;;  %v453_v3 = vsub.f32 %v451_v54, %v452_v61  ;;  %v1528_v39 = vpack.c.bf16 %v368_v19, %v361_v40  ;;  %v1432_v50 = vpack.c.bf16 %v370_v13, %v363_v9 }
  0x76   : > { %v447_v15 = vand.u32 4294901760, %v446_v62  ;;  %v2197_v17 = vpack.c.bf16 %v466_v6, %v459_v4  ;;  %v460_v21 = vsub.f32 %v458_v37, %v459_v4  ;;  %v467_v22 = vsub.f32 %v465_v32, %v466_v6 }
  0x77   : > { %1519 = vmatpush3.bf16.msra.mxu0 %v2099_v58  ;;  %1423 = vmatpush3.bf16.msra.mxu1 %v2099_v58  ;;  %v454_v16 = vand.u32 4294901760, %v453_v3  ;;  %v2213_v20 = vpack.c.bf16 %v2117_v2, %v2046_v27  ;;  %v2217_v30 = vpack.c.bf16 %v2076_v44, %v2071_v41  ;;  %v2221_v40 = vpack.c.bf16 %v2083_v47, %v2078_v45  ;;  %v197_v45 = vld [vmem:[%s2019_s22] sm:$0xff] }
  0x78   : > { %1521 = vmatprep.subr.bf16.mxu0 %v2167_v46  ;;  %1425 = vmatprep.subr.bf16.mxu1 %v2167_v46  ;;  %v461_v28 = vand.u32 4294901760, %v460_v21  ;;  %v468_v38 = vand.u32 4294901760, %v467_v22  ;;  %v2225_v19 = vpack.c.bf16 %v2087_v49, %v2085_v48  ;;  %v2229_v35 = vpack.c.bf16 %v2125_v11, %v2122_v10  ;;  %v198_v47 = vld [vmem:[%s2019_s22 + $0x20] sm:$0xff] }
  0x79   : > { %v2201_v26 = vpack.c.bf16 %v454_v16, %v447_v15  ;;  %v2233_v27 = vpack.c.bf16 %v2132_v5, %v2130_v14  ;;  %v2235_v2 = vpack.c.bf16 %v451_v54, %v444_v36  ;;  %v2237_v41 = vpack.c.bf16 %v465_v32, %v458_v37 }
  0x7a   : > { %v2207_v51 = vpack.c.bf16 %v468_v38, %v461_v28 }
  0x7b   : > { %1523 = vmatpush3.bf16.msra.mxu0 %v2167_v46  ;;  %1427 = vmatpush3.bf16.msra.mxu1 %v2167_v46 }
  0x7c   : > { %1525 = vmatprep.subr.bf16.mxu0 %v2195_v7  ;;  %1429 = vmatprep.subr.bf16.mxu1 %v2195_v7 }
  0x7f   : > { %1527 = vmatpush3.bf16.msra.mxu0 %v2195_v7  ;;  %1431 = vmatpush3.bf16.msra.mxu1 %v2195_v7 }
  0x80   : > { %1529 = vmatprep.subr.bf16.mxu0 %v1528_v39  ;;  %1433 = vmatprep.subr.bf16.mxu1 %v1432_v50 }
  0xce   : > { %v219_v44 = vpop.permute.xlu1 %218  ;;  %v211_v52 = vpop.permute.xlu0 %210 }
  0xcf   : > { %v233_v49 = vsel %vm232_vm0, %v197_v45, %v211_v52 }
  0xd0   : > { %v236_v14 = vsel %vm235_vm1, %v233_v49, %v219_v44 }
  0xd2   : > { %v221_v53 = vpop.permute.xlu1 %220  ;;  %v213_v48 = vpop.permute.xlu0 %212 }
  0xd3   : > { %v234_v55 = vsel %vm232_vm0, %v198_v47, %v213_v48 }
  0xd4   : > { %v237_v11 = vsel %vm235_vm1, %v234_v55, %v221_v53 }
  0xd6   : > { %v229_v10 = vpop.permute.xlu1 %228  ;;  %v227_v56 = vpop.permute.xlu0 %226 }
  0xd7   : > { %v240_v5 = vsel %vm238_vm2, %v237_v11, %v229_v10  ;;  %v239_v36 = vsel %vm238_vm2, %v236_v14, %v227_v56 }
  0xd8   : > { %v2241_v54 = vand.u32 4294901760, %v240_v5  ;;  %v338_v57 = vand.u32 4294901760, %v239_v36 }
  0xda   : > { %v2244_v60 = vsub.f32 %v240_v5, %v2241_v54  ;;  %v339_v61 = vsub.f32 %v239_v36, %v338_v57 }
  0xdc   : > { %v340_v37 = vand.u32 4294901760, %v339_v61  ;;  %v350_v32 = vand.u32 4294901760, %v2244_v60 }
  0xde   : > { %1327 = vmatprep.mubr.f32.mxu0 %v340_v37  ;;  %v341_v62 = vsub.f32 %v339_v61, %v340_v37  ;;  %v351_v3 = vsub.f32 %v2244_v60, %v350_v32 }
  0xdf   : > { %1328 = vmatmul.mubr.f32.vlgmr.msra.gmra.mrb[0].mxu0 %v350_v32 }
  0xe0   : > { %1531 = vmatpush3.bf16.msra.mxu0 %v1528_v39  ;;  %1362 = vmatprep.mubr.f32.mxu0 %v338_v57  ;;  %v342_v4 = vand.u32 4294901760, %v341_v62  ;;  %v352_v6 = vand.u32 4294901760, %v351_v3 }
  0xe1   : > { %1533 = vmatprep.subr.bf16.mxu0 %v2101_v59 }
  0xe2   : > { %1222 = vmatprep.mubr.f32.mxu1 %v342_v4 }
  0xe3   : > { %1223 = vmatmul.mubr.f32.vlgmr.msra.gmra.mrb[0].mxu1 %v352_v6 }
  0xe4   : > { %1435 = vmatpush3.bf16.msra.mxu1 %v1432_v50  ;;  %1535 = vmatpush3.bf16.msra.mxu0 %v2101_v59 }
  0xe5   : > { %1257 = vmatprep.mubr.f32.mxu1 %v338_v57  ;;  %1437 = vmatprep.subr.bf16.mxu1 %v2127_v12 }
  0xe6   : > { %1537 = vmatprep.subr.bf16.mxu0 %v2107_v63 }
  0xe8   : > { %1439 = vmatpush3.bf16.msra.mxu1 %v2127_v12  ;;  %1539 = vmatpush3.bf16.msra.mxu0 %v2107_v63 }
  0xe9   : > { %1441 = vmatprep.subr.bf16.mxu1 %v2136_v8  ;;  %1541 = vmatprep.subr.bf16.mxu0 %v2110_v1 }
  0xec   : > { %1443 = vmatpush3.bf16.msra.mxu1 %v2136_v8  ;;  %1543 = vmatpush3.bf16.msra.mxu0 %v2110_v1 }
  0xed   : > { %1445 = vmatprep.subr.bf16.mxu1 %v2148_v23  ;;  %1545 = vmatprep.subr.bf16.mxu0 %v2150_v24 }
  0xf0   : > { %1447 = vmatpush3.bf16.msra.mxu1 %v2148_v23  ;;  %1547 = vmatpush3.bf16.msra.mxu0 %v2150_v24 }
  0xf1   : > { %1449 = vmatprep.subr.bf16.mxu1 %v2175_v31  ;;  %1549 = vmatprep.subr.bf16.mxu0 %v2154_v29 }
  0xf4   : > { %1451 = vmatpush3.bf16.msra.mxu1 %v2175_v31  ;;  %1551 = vmatpush3.bf16.msra.mxu0 %v2154_v29 }
  0xf5   : > { %1453 = vmatprep.subr.bf16.mxu1 %v2183_v43  ;;  %1553 = vmatprep.subr.bf16.mxu0 %v2187_v0 }
  0xf8   : > { %1455 = vmatpush3.bf16.msra.mxu1 %v2183_v43  ;;  %1555 = vmatpush3.bf16.msra.mxu0 %v2187_v0 }
  0xf9   : > { %1457 = vmatprep.subr.bf16.mxu1 %v2201_v26  ;;  %1557 = vmatprep.subr.bf16.mxu0 %v2197_v17 }
  0xfc   : > { %1459 = vmatpush3.bf16.msra.mxu1 %v2201_v26  ;;  %1559 = vmatpush3.bf16.msra.mxu0 %v2197_v17 }
  0xfd   : > { %1461 = vmatprep.subr.bf16.mxu1 %v2207_v51  ;;  %1561 = vmatprep.subr.bf16.mxu0 %v2036_v18 }
  0xff   : > { %1363 = vmatmul.mubr.f32.vlgmr.msra.gmra.mrb[0].mxu0 %v2241_v54 }
 0x100   : > { %1463 = vmatpush3.bf16.msra.mxu1 %v2207_v51  ;;  %1563 = vmatpush3.bf16.msra.mxu0 %v2036_v18 }
 0x101   : > { %1397 = vmatprep.mubr.f32.mxu0 %v338_v57  ;;  %1465 = vmatprep.subr.bf16.mxu1 %v2213_v20 }
 0x102   : > { %1565 = vmatprep.subr.bf16.mxu0 %v2042_v25 }
 0x103   : > { %1258 = vmatmul.mubr.f32.vlgmr.msra.gmra.mrb[0].mxu1 %v2241_v54 }
 0x104   : > { %1467 = vmatpush3.bf16.msra.mxu1 %v2213_v20  ;;  %1292 = vmatprep.mubr.f32.mxu1 %v339_v61 }
 0x105   : > { %1567 = vmatpush3.bf16.msra.mxu0 %v2042_v25  ;;  %1469 = vmatprep.subr.bf16.mxu1 %v2217_v30 }
 0x106   : > { %1569 = vmatprep.subr.bf16.mxu0 %v2058_v33 }
 0x108   : > { %1471 = vmatpush3.bf16.msra.mxu1 %v2217_v30 }
 0x109   : > { %1571 = vmatpush3.bf16.msra.mxu0 %v2058_v33  ;;  %1473 = vmatprep.subr.bf16.mxu1 %v2221_v40 }
 0x10a   : > { %1573 = vmatprep.subr.bf16.mxu0 %v2060_v34 }
 0x10c   : > { %1475 = vmatpush3.bf16.msra.mxu1 %v2221_v40 }
 0x10d   : > { %1575 = vmatpush3.bf16.msra.mxu0 %v2060_v34  ;;  %1477 = vmatprep.subr.bf16.mxu1 %v2225_v19 }
 0x10e   : > { %1577 = vmatprep.subr.bf16.mxu0 %v2073_v42 }
 0x110   : > { %1479 = vmatpush3.bf16.msra.mxu1 %v2225_v19 }
 0x111   : > { %1579 = vmatpush3.bf16.msra.mxu0 %v2073_v42  ;;  %1481 = vmatprep.subr.bf16.mxu1 %v2229_v35 }
 0x112   : > { %1581 = vmatprep.subr.bf16.mxu0 %v2099_v58 }
 0x114   : > { %1483 = vmatpush3.bf16.msra.mxu1 %v2229_v35 }
 0x115   : > { %1583 = vmatpush3.bf16.msra.mxu0 %v2099_v58  ;;  %1485 = vmatprep.subr.bf16.mxu1 %v2233_v27 }
 0x116   : > { %1585 = vmatprep.subr.bf16.mxu0 %v2167_v46 }
 0x118   : > { %1487 = vmatpush3.bf16.msra.mxu1 %v2233_v27 }
 0x119   : > { %1587 = vmatpush3.bf16.msra.mxu0 %v2167_v46  ;;  %1489 = vmatprep.subr.bf16.mxu1 %v2235_v2 }
 0x11a   : > { %1589 = vmatprep.subr.bf16.mxu0 %v2195_v7 }
 0x11c   : > { %1491 = vmatpush3.bf16.msra.mxu1 %v2235_v2 }
 0x11d   : > { %1591 = vmatpush3.bf16.msra.mxu0 %v2195_v7  ;;  %1493 = vmatprep.subr.bf16.mxu1 %v2237_v41 }
 0x120   : > { %1398 = vmatmul.mubr.f32.vlgmr.msra.gmra.mrb[0].mxu0 %v2241_v54  ;;  %1495 = vmatpush3.bf16.msra.mxu1 %v2237_v41 }
 0x123   : > { %1293 = vmatmul.mubr.f32.vlgmr.msra.gmra.mrb[0].mxu1 %v2244_v60 }
 0x1f3   : > { %v1399_v18 = vpop.f32.mrb[0].mxu0 }
 0x1f4   : > { %v931_v25 = vpop.f32.mrb[1].mxu0 }
 0x1f6   : > { %v1294_v33 = vpop.f32.mrb[0].mxu1 }
 0x1f7   : > { %v1592_v34 = vadd.f32 %v1399_v18, %v1294_v33  ;;  %v615_v42 = vpop.f32.mrb[1].mxu1 }
 0x1f8   : > { %v1593_v58 = vadd.f32 %v931_v25, %v615_v42 }
 0x1f9   : > { %942 = vst [vmem:[%s194_s7 + $0x8] sm:$0xff] %v1592_v34 }
 0x1fa   : > { %941 = vst [vmem:[%s194_s7] sm:$0xff] %v1593_v58 }
 0x1fb   : > { %1753 = shalt.err (!%p1750_p5)
}
 0x1fc   : > { %s1754_s8 = scalar_lea.hbm %s2319_s30, 256  ;;  %s1758_s17 = scalar_lea.hbm %s2370_s2, 512 }
 0x1fd   : > { %p1755_p9 = scmp.ne.s32.totalorder %s2319_s30, %s1754_s8  ;;  %p1759_p3 = scmp.lt.u32.totalorder %s2319_s30, %s2370_s2 }
 0x1fe   : > { %p1760_p7 = scmp.lt.u32.totalorder %s1758_s17, %s1754_s8  ;;  %p1762_p4 = scmp.lt.u32.totalorder %s1754_s8, %s2319_s30 }
 0x1ff   : > { %p1756_p1 = pnand %p1755_p9, %p1952_p10 }
 0x200   : > { %p1761_p13 = por %p1760_p7, %p1759_p3 }
 0x201   : > { %p1757_p2 = pneg %p1756_p1 }
 0x202   : > { %p1763_p6 = por %p1762_p4, %p1761_p13 }
 0x204   : > { %p1764_p8 = pnand %p1763_p6, %p1757_p2 }
 0x206   : > { %1767 = shalt.err (!%p1764_p8)
}
 0x207   : > { %s1836_s6 = smov 128   ;;  %s1837_s7 = smov 8  }
 0x208   : > { %1608 = dma.vmem_to_hbm [thread:$0]  (%p1952_p10), %s2314_s4, 256, %s2319_s30, %s944_s23, %s1836_s6, %s1836_s6, %s1837_s7  }
 0x209 PF: > { %s973_s5 = sand.u32 1, %s1806_s9   ;;  %p2388_p12 = scmp.ne.s32.totalorder %s2378_s20, 0 }
 0x20a   : > { %p2389_p11 = scmp.ge.s32.totalorder %s1826_s14, 2  ;;  %s974_s15 = scalar_lea.sflag [#allocation4], %s973_s5 }
 0x20c   : > { %p1619_p0 = pnand %p2389_p11, %p2388_p12 }
 0x20e   : > { %1801 = dma.done.wait (!%p1619_p0), %s974_s15, 256  }
 0x20f   : > { %1803 = vsyncadd (!%p1619_p0), %s974_s15, 4294967040  ;;  %s19_s14 = sadd.s32 1, %s1826_s14   ;;  %s2390_s9 = smov %s1810_s10 }
 0x210   : > { %p16_p5 = scmp.ge.s32.totalorder %s19_s14, 4   ;;  %s2391_s10 = smov %s1814_s11 }
 0x211   : > { %s2392_s11 = smov %s1961_s28  ;;  %s2393_s12 = smov %s1822_s13 }
 0x212   : > { %s2394_s13 = smov %s2396_s25  ;;  %18 = sbr.rel (!%p16_p5) target bundleno = 7 (0x7), region = 81 }
 0x219   :  { %979 = vsyncpa [#allocation3], 1 }
 0x21a   :  { %981 = vsyncpa [#allocation3 + $0x1], 1 }
 0x21b   :  { %982 = vsyncpa [#allocation6], 1 }
 0x21c   :  { %984 = vsyncpa [#allocation6 + $0x1], 1 }
 0x21d   :  { %985 = vsyncpa [#allocation4], 1 }
 0x21e   :  { %987 = vsyncpa [#allocation4 + $0x1], 1 }

</bundles_post_ra>
